<compile_context>
chip_gen: v6e
topology: v6e:2x2x1
jax: 0.10.0
libtpu: 0.0.40
codegen_flags: <defaults>
</compile_context>

<pallas_src>
import jax
import jax.numpy as jnp
import numpy as np
from jax.experimental import pallas as pl
from jax.experimental.pallas import tpu as pltpu

LATENT_DIM = 8
X_DIM = 4
COND_DIM = 2
LANES = 128       # lane width of the packed weight buffer
ACT_LANES = 32    # lanes of the merged activation input
OUT_LANES = 32    # lanes of the merged output
MAX_TB = 2048     # cap on the batch tile (rows per grid step)

# Row offsets (all multiples of 8) inside the single packed weight buffer.
_R_W1, _R_W2, _R_W3 = 0, 8, 72
_R_WD1Z, _R_WD1C = 104, 112
_R_WD2, _R_WD3 = 120, 152
_R_BIAS = 216
_TOTAL_W_ROWS = 224


def _round_up(n, m):
    return ((n + m - 1) // m) * m


# ---------------------------------------------------------------------------
# Pallas kernel: whole CVAE forward (6 small matmuls + ReLUs + reparameterize)
# ---------------------------------------------------------------------------
def cvae_kernel(act_ref, w_ref, out_ref):
    f32 = jnp.float32
    hi = jax.lax.Precision.HIGHEST

    def mm(a, w):
        return jnp.dot(a, w, preferred_element_type=f32, precision=hi)

    act = act_ref[...]                        # (TB, 32)

    b = w_ref[_R_BIAS:_R_BIAS + 8, :]         # (8, 128) packed biases
    b1, b2, b3 = b[0:1, :], b[1:2, :], b[2:3, :]
    bd1, bd2, bd3 = b[3:4, :], b[4:5, :], b[5:6, :]

    # ---- Encoder: Linear(6,64) -> ReLU -> Linear(64,32) -> ReLU -> Linear(32,16)
    h = jnp.maximum(mm(act[:, 0:8], w_ref[_R_W1:_R_W1 + 8, :]) + b1, 0.0)
    h = jnp.maximum(mm(h[:, 0:64], w_ref[_R_W2:_R_W2 + 64, :]) + b2, 0.0)
    h3 = mm(h[:, 0:32], w_ref[_R_W3:_R_W3 + 32, :]) + b3     # mu = lanes 0..7, logvar = 8..15

    # ---- Reparameterize: z = mu + eps * exp(0.5 * logvar)
    mu = h3[:, 0:LATENT_DIM]
    lv = h3[:, LATENT_DIM:2 * LATENT_DIM]
    z = mu + act[:, 8:16] * jnp.exp(0.5 * lv)                # (TB, 8)

    # ---- Decoder: Linear(10,32) -> ReLU -> Linear(32,64) -> ReLU -> Linear(64,4)
    # concat([z, cond]) @ wd1 == z @ wd1[z rows] + cond @ wd1[cond rows]
    d = (mm(z, w_ref[_R_WD1Z:_R_WD1Z + 8, :])
         + mm(act[:, 16:24], w_ref[_R_WD1C:_R_WD1C + 8, :])
         + bd1)
    d = jnp.maximum(d, 0.0)
    d = jnp.maximum(mm(d[:, 0:32], w_ref[_R_WD2:_R_WD2 + 32, :]) + bd2, 0.0)
    xr = mm(d[:, 0:64], w_ref[_R_WD3:_R_WD3 + 64, :]) + bd3  # x_recon = lanes 0..3

    # ---- Single merged store: x_recon | mu | logvar | zeros  -> (TB, 32)
    zeros8 = jnp.zeros((act.shape[0], 8), f32)
    out_ref[...] = jnp.concatenate([xr[:, 0:8], h3[:, 0:16], zeros8], axis=1)


# ---------------------------------------------------------------------------
# Parameter setup (deterministic, torch-nn.Linear-like uniform init)
# ---------------------------------------------------------------------------
def _linear_params(key, fan_in, fan_out):
    kw, kb = jax.random.split(key)
    bound = 1.0 / np.sqrt(fan_in)
    w = jax.random.uniform(kw, (fan_in, fan_out), jnp.float32, -bound, bound)
    b = jax.random.uniform(kb, (fan_out,), jnp.float32, -bound, bound)
    return w, b


def init_cvae_params(key):
    keys = jax.random.split(key, 6)
    return {
        "e1": _linear_params(keys[0], X_DIM + COND_DIM, 64),
        "e2": _linear_params(keys[1], 64, 32),
        "e3": _linear_params(keys[2], 32, 2 * LATENT_DIM),
        "d1": _linear_params(keys[3], LATENT_DIM + COND_DIM, 32),
        "d2": _linear_params(keys[4], 32, 64),
        "d3": _linear_params(keys[5], 64, X_DIM),
    }


# ---------------------------------------------------------------------------
# One-time packing: all weights + biases into ONE (224, 128) f32 buffer.
# ---------------------------------------------------------------------------
def pack_cvae_params(params):
    w1, b1 = params["e1"]
    w2, b2 = params["e2"]
    w3, b3 = params["e3"]
    wd1, bd1 = params["d1"]
    wd2, bd2 = params["d2"]
    wd3, bd3 = params["d3"]

    buf = jnp.zeros((_TOTAL_W_ROWS, LANES), jnp.float32)

    def put(buf, row, w):
        return buf.at[row:row + w.shape[0], : w.shape[1]].set(w)

    buf = put(buf, _R_W1, w1)                      # (6, 64)   in rows 0..7
    buf = put(buf, _R_W2, w2)                      # (64, 32)  in rows 8..71
    buf = put(buf, _R_W3, w3)                      # (32, 16)  in rows 72..103
    buf = put(buf, _R_WD1Z, wd1[:LATENT_DIM])      # (8, 32)   in rows 104..111
    buf = put(buf, _R_WD1C, wd1[LATENT_DIM:])      # (2, 32)   in rows 112..119
    buf = put(buf, _R_WD2, wd2)                    # (32, 64)  in rows 120..151
    buf = put(buf, _R_WD3, wd3)                    # (64, 4)   in rows 152..215
    for i, vec in enumerate((b1, b2, b3, bd1, bd2, bd3)):
        buf = buf.at[_R_BIAS + i, : vec.shape[0]].set(vec)   # rows 216..221
    return buf


# ---------------------------------------------------------------------------
# Forward: build one narrow merged activation buffer, run gridded kernel, split.
# ---------------------------------------------------------------------------
def _pick_tiles(B):
    # Bucket padded batch to the next power of two (>= 8) to stabilize compiles,
    # then pick TB so there are >= 2 grid steps whenever possible (v7x megacore).
    Bp = max(8, 1 << (B - 1).bit_length())
    TB = min(MAX_TB, max(8, Bp // 2))
    return Bp, TB  # TB always divides Bp (both powers of two, TB <= Bp)


@jax.jit
def cvae_forward(packed_w, x, cond, eps):
    B = x.shape[0]
    Bp, TB = _pick_tiles(B)

    # Merged activation row: [x(4) | cond(2) | 0(2) | eps(8) | cond(2) | 0(14)]
    zero2 = jnp.zeros((B, 2), jnp.float32)
    zero_tail = jnp.zeros((B, ACT_LANES - (X_DIM + COND_DIM + 2 + LATENT_DIM + COND_DIM)),
                          jnp.float32)
    row = jnp.concatenate(
        [x.astype(jnp.float32), cond.astype(jnp.float32), zero2,
         eps.astype(jnp.float32), cond.astype(jnp.float32), zero_tail], axis=1)
    act = jnp.zeros((Bp, ACT_LANES), jnp.float32).at[:B].set(row)

    act_spec = pl.BlockSpec((TB, ACT_LANES), lambda i: (i, 0))
    out_spec = pl.BlockSpec((TB, OUT_LANES), lambda i: (i, 0))
    w_spec = pl.BlockSpec((_TOTAL_W_ROWS, LANES), lambda i: (0, 0))   # VMEM-resident

    out = pl.pallas_call(
        cvae_kernel,
        out_shape=jax.ShapeDtypeStruct((Bp, OUT_LANES), jnp.float32),
        grid_spec=pltpu.PrefetchScalarGridSpec(
            num_scalar_prefetch=0,
            grid=(Bp // TB,),
            in_specs=[act_spec, w_spec],
            out_specs=out_spec),
        compiler_params=pltpu.CompilerParams(dimension_semantics=("parallel",)),
    )(act, packed_w)

    x_recon = out[:B, 0:X_DIM]
    mu = out[:B, 8:8 + LATENT_DIM]
    logvar = out[:B, 16:16 + LATENT_DIM]
    return x_recon, mu, logvar


# ---------------------------------------------------------------------------
# Pure-JAX reference (mirrors the PyTorch forward exactly, same eps)
# ---------------------------------------------------------------------------
def cvae_reference(params, x, cond, eps):
    def lin(a, wb):
        w, b = wb
        return a @ w + b

    xc = jnp.concatenate([x, cond], axis=1)
    h = jax.nn.relu(lin(xc, params["e1"]))
    h = jax.nn.relu(lin(h, params["e2"]))
    h = lin(h, params["e3"])
    mu, logvar = h[:, :LATENT_DIM], h[:, LATENT_DIM:]
    std = jnp.exp(0.5 * logvar)
    z = mu + eps * std
    zc = jnp.concatenate([z, cond], axis=1)
    d = jax.nn.relu(lin(zc, params["d1"]))
    d = jax.nn.relu(lin(d, params["d2"]))
    x_recon = lin(d, params["d3"])
    return x_recon, mu, logvar


if __name__ == "__main__":
    key = jax.random.PRNGKey(0)
    k_params, k_x, k_cond, k_eps = jax.random.split(key, 4)

    B = 8
    params = init_cvae_params(k_params)
    packed_w = pack_cvae_params(params)   # pad/pack weights ONCE, outside the hot path

    x = jax.random.normal(k_x, (B, X_DIM), jnp.float32)
    cond = jax.random.normal(k_cond, (B, COND_DIM), jnp.float32)
    # TODO(synk): torch.randn_like(std) is sampled outside the kernel (deterministic eps
    # passed in) so the Pallas forward is a pure function of its inputs.
    eps = jax.random.normal(k_eps, (B, LATENT_DIM), jnp.float32)

    x_recon, mu, logvar = cvae_forward(packed_w, x, cond, eps)
    jax.block_until_ready((x_recon, mu, logvar))

    # sanity-check against the pure-JAX reference
    xr_ref, mu_ref, lv_ref = cvae_reference(params, x, cond, eps)
    np.testing.assert_allclose(np.asarray(x_recon), np.asarray(xr_ref), rtol=1e-5, atol=1e-5)
    np.testing.assert_allclose(np.asarray(mu), np.asarray(mu_ref), rtol=1e-5, atol=1e-5)
    np.testing.assert_allclose(np.asarray(logvar), np.asarray(lv_ref), rtol=1e-5, atol=1e-5)

    assert x_recon.shape == (B, X_DIM) and mu.shape == (B, LATENT_DIM) and logvar.shape == (B, LATENT_DIM)
    print("KERNEL_OK")
</pallas_src>

<mosaic_0001>
module attributes {stable_mosaic.version = 11 : i64} {
  func.func @cvae_kernel(%arg0: i32, %arg1: memref<8x32xf32, #tpu.memory_space<vmem>>, %arg2: memref<224x128xf32, #tpu.memory_space<vmem>>, %arg3: memref<8x32xf32, #tpu.memory_space<vmem>>) attributes {dimension_semantics = [#tpu.dimension_semantics<parallel>], iteration_bounds = array<i64: 1>, scalar_prefetch = 0 : i64, scratch_operands = 0 : i64, tpu.core_type = #tpu.core_type<tc>, window_params = [{transform_indices = @transform_0, window_bounds = array<i64: 8, 32>}, {pipeline_mode = #tpu.pipeline_mode<synchronous>, transform_indices = @transform_1, window_bounds = array<i64: 224, 128>}, {transform_indices = @transform_2, window_bounds = array<i64: 8, 32>}]} {
    %c0 = arith.constant 0 : index
    %c0_0 = arith.constant 0 : index
    %0 = vector.load %arg1[%c0, %c0_0] : memref<8x32xf32, #tpu.memory_space<vmem>>, vector<8x32xf32>
    %c216 = arith.constant 216 : index
    %c0_1 = arith.constant 0 : index
    %1 = vector.load %arg2[%c216, %c0_1] : memref<224x128xf32, #tpu.memory_space<vmem>>, vector<8x128xf32>
    %2 = vector.extract_strided_slice %1 {offsets = [0, 0], sizes = [1, 128], strides = [1, 1]} : vector<8x128xf32> to vector<1x128xf32>
    %3 = vector.extract_strided_slice %1 {offsets = [1, 0], sizes = [1, 128], strides = [1, 1]} : vector<8x128xf32> to vector<1x128xf32>
    %4 = vector.extract_strided_slice %1 {offsets = [2, 0], sizes = [1, 128], strides = [1, 1]} : vector<8x128xf32> to vector<1x128xf32>
    %5 = vector.extract_strided_slice %1 {offsets = [3, 0], sizes = [1, 128], strides = [1, 1]} : vector<8x128xf32> to vector<1x128xf32>
    %6 = vector.extract_strided_slice %1 {offsets = [4, 0], sizes = [1, 128], strides = [1, 1]} : vector<8x128xf32> to vector<1x128xf32>
    %7 = vector.extract_strided_slice %1 {offsets = [5, 0], sizes = [1, 128], strides = [1, 1]} : vector<8x128xf32> to vector<1x128xf32>
    %8 = vector.extract_strided_slice %0 {offsets = [0, 0], sizes = [8, 8], strides = [1, 1]} : vector<8x32xf32> to vector<8x8xf32>
    %c0_2 = arith.constant 0 : index
    %c0_3 = arith.constant 0 : index
    %9 = vector.load %arg2[%c0_2, %c0_3] : memref<224x128xf32, #tpu.memory_space<vmem>>, vector<8x128xf32>
    %cst = arith.constant dense<0.000000e+00> : vector<8x128xf32>
    %10 = tpu.matmul %8, %9, %cst {dimension_numbers = #tpu.dot_dimension_numbers<[1], [0], [0], [1], [0, 0, 1, 1], [], []>, precision = #tpu.contract_precision<fp32>} : vector<8x8xf32>, vector<8x128xf32>, vector<8x128xf32> -> vector<8x128xf32>
    %11 = vector.broadcast %2 : vector<1x128xf32> to vector<8x128xf32>
    %12 = arith.addf %10, %11 : vector<8x128xf32>
    %cst_4 = arith.constant 0.000000e+00 : f32
    %13 = vector.broadcast %cst_4 : f32 to vector<8x128xf32>
    %14 = arith.maximumf %12, %13 : vector<8x128xf32>
    %15 = vector.extract_strided_slice %14 {offsets = [0, 0], sizes = [8, 64], strides = [1, 1]} : vector<8x128xf32> to vector<8x64xf32>
    %c8 = arith.constant 8 : index
    %c0_5 = arith.constant 0 : index
    %16 = vector.load %arg2[%c8, %c0_5] : memref<224x128xf32, #tpu.memory_space<vmem>>, vector<64x128xf32>
    %cst_6 = arith.constant dense<0.000000e+00> : vector<8x128xf32>
    %17 = tpu.matmul %15, %16, %cst_6 {dimension_numbers = #tpu.dot_dimension_numbers<[1], [0], [0], [1], [0, 0, 1, 1], [], []>, precision = #tpu.contract_precision<fp32>} : vector<8x64xf32>, vector<64x128xf32>, vector<8x128xf32> -> vector<8x128xf32>
    %18 = vector.broadcast %3 : vector<1x128xf32> to vector<8x128xf32>
    %19 = arith.addf %17, %18 : vector<8x128xf32>
    %cst_7 = arith.constant 0.000000e+00 : f32
    %20 = vector.broadcast %cst_7 : f32 to vector<8x128xf32>
    %21 = arith.maximumf %19, %20 : vector<8x128xf32>
    %22 = vector.extract_strided_slice %21 {offsets = [0, 0], sizes = [8, 32], strides = [1, 1]} : vector<8x128xf32> to vector<8x32xf32>
    %c72 = arith.constant 72 : index
    %c0_8 = arith.constant 0 : index
    %23 = vector.load %arg2[%c72, %c0_8] : memref<224x128xf32, #tpu.memory_space<vmem>>, vector<32x128xf32>
    %cst_9 = arith.constant dense<0.000000e+00> : vector<8x128xf32>
    %24 = tpu.matmul %22, %23, %cst_9 {dimension_numbers = #tpu.dot_dimension_numbers<[1], [0], [0], [1], [0, 0, 1, 1], [], []>, precision = #tpu.contract_precision<fp32>} : vector<8x32xf32>, vector<32x128xf32>, vector<8x128xf32> -> vector<8x128xf32>
    %25 = vector.broadcast %4 : vector<1x128xf32> to vector<8x128xf32>
    %26 = arith.addf %24, %25 : vector<8x128xf32>
    %27 = vector.extract_strided_slice %26 {offsets = [0, 0], sizes = [8, 8], strides = [1, 1]} : vector<8x128xf32> to vector<8x8xf32>
    %28 = vector.extract_strided_slice %26 {offsets = [0, 8], sizes = [8, 8], strides = [1, 1]} : vector<8x128xf32> to vector<8x8xf32>
    %29 = vector.extract_strided_slice %0 {offsets = [0, 8], sizes = [8, 8], strides = [1, 1]} : vector<8x32xf32> to vector<8x8xf32>
    %cst_10 = arith.constant 5.000000e-01 : f32
    %30 = vector.broadcast %cst_10 : f32 to vector<8x8xf32>
    %31 = arith.mulf %30, %28 : vector<8x8xf32>
    %32 = math.exp %31 : vector<8x8xf32>
    %33 = arith.mulf %29, %32 : vector<8x8xf32>
    %34 = arith.addf %27, %33 : vector<8x8xf32>
    %c104 = arith.constant 104 : index
    %c0_11 = arith.constant 0 : index
    %35 = vector.load %arg2[%c104, %c0_11] : memref<224x128xf32, #tpu.memory_space<vmem>>, vector<8x128xf32>
    %cst_12 = arith.constant dense<0.000000e+00> : vector<8x128xf32>
    %36 = tpu.matmul %34, %35, %cst_12 {dimension_numbers = #tpu.dot_dimension_numbers<[1], [0], [0], [1], [0, 0, 1, 1], [], []>, precision = #tpu.contract_precision<fp32>} : vector<8x8xf32>, vector<8x128xf32>, vector<8x128xf32> -> vector<8x128xf32>
    %37 = vector.extract_strided_slice %0 {offsets = [0, 16], sizes = [8, 8], strides = [1, 1]} : vector<8x32xf32> to vector<8x8xf32>
    %c112 = arith.constant 112 : index
    %c0_13 = arith.constant 0 : index
    %38 = vector.load %arg2[%c112, %c0_13] : memref<224x128xf32, #tpu.memory_space<vmem>>, vector<8x128xf32>
    %cst_14 = arith.constant dense<0.000000e+00> : vector<8x128xf32>
    %39 = tpu.matmul %37, %38, %cst_14 {dimension_numbers = #tpu.dot_dimension_numbers<[1], [0], [0], [1], [0, 0, 1, 1], [], []>, precision = #tpu.contract_precision<fp32>} : vector<8x8xf32>, vector<8x128xf32>, vector<8x128xf32> -> vector<8x128xf32>
    %40 = arith.addf %36, %39 : vector<8x128xf32>
    %41 = vector.broadcast %5 : vector<1x128xf32> to vector<8x128xf32>
    %42 = arith.addf %40, %41 : vector<8x128xf32>
    %cst_15 = arith.constant 0.000000e+00 : f32
    %43 = vector.broadcast %cst_15 : f32 to vector<8x128xf32>
    %44 = arith.maximumf %42, %43 : vector<8x128xf32>
    %45 = vector.extract_strided_slice %44 {offsets = [0, 0], sizes = [8, 32], strides = [1, 1]} : vector<8x128xf32> to vector<8x32xf32>
    %c120 = arith.constant 120 : index
    %c0_16 = arith.constant 0 : index
    %46 = vector.load %arg2[%c120, %c0_16] : memref<224x128xf32, #tpu.memory_space<vmem>>, vector<32x128xf32>
    %cst_17 = arith.constant dense<0.000000e+00> : vector<8x128xf32>
    %47 = tpu.matmul %45, %46, %cst_17 {dimension_numbers = #tpu.dot_dimension_numbers<[1], [0], [0], [1], [0, 0, 1, 1], [], []>, precision = #tpu.contract_precision<fp32>} : vector<8x32xf32>, vector<32x128xf32>, vector<8x128xf32> -> vector<8x128xf32>
    %48 = vector.broadcast %6 : vector<1x128xf32> to vector<8x128xf32>
    %49 = arith.addf %47, %48 : vector<8x128xf32>
    %cst_18 = arith.constant 0.000000e+00 : f32
    %50 = vector.broadcast %cst_18 : f32 to vector<8x128xf32>
    %51 = arith.maximumf %49, %50 : vector<8x128xf32>
    %52 = vector.extract_strided_slice %51 {offsets = [0, 0], sizes = [8, 64], strides = [1, 1]} : vector<8x128xf32> to vector<8x64xf32>
    %c152 = arith.constant 152 : index
    %c0_19 = arith.constant 0 : index
    %53 = vector.load %arg2[%c152, %c0_19] : memref<224x128xf32, #tpu.memory_space<vmem>>, vector<64x128xf32>
    %cst_20 = arith.constant dense<0.000000e+00> : vector<8x128xf32>
    %54 = tpu.matmul %52, %53, %cst_20 {dimension_numbers = #tpu.dot_dimension_numbers<[1], [0], [0], [1], [0, 0, 1, 1], [], []>, precision = #tpu.contract_precision<fp32>} : vector<8x64xf32>, vector<64x128xf32>, vector<8x128xf32> -> vector<8x128xf32>
    %55 = vector.broadcast %7 : vector<1x128xf32> to vector<8x128xf32>
    %56 = arith.addf %54, %55 : vector<8x128xf32>
    %cst_21 = arith.constant 0.000000e+00 : f32
    %57 = vector.broadcast %cst_21 : f32 to vector<8x8xf32>
    %58 = vector.extract_strided_slice %56 {offsets = [0, 0], sizes = [8, 8], strides = [1, 1]} : vector<8x128xf32> to vector<8x8xf32>
    %59 = vector.extract_strided_slice %26 {offsets = [0, 0], sizes = [8, 16], strides = [1, 1]} : vector<8x128xf32> to vector<8x16xf32>
    %60 = tpu.concatenate %58, %59, %57 in 1 : vector<8x8xf32>, vector<8x16xf32>, vector<8x8xf32> -> vector<8x32xf32>
    %c0_22 = arith.constant 0 : index
    %c0_23 = arith.constant 0 : index
    %61 = vector.load %arg3[%c0_22, %c0_23] : memref<8x32xf32, #tpu.memory_space<vmem>>, vector<8x32xf32>
    tpu.vector_store %arg3[%c0_22, %c0_23], %60 {strides = array<i32>} : memref<8x32xf32, #tpu.memory_space<vmem>>, vector<8x32xf32>,
    return
  }
  func.func @transform_0(%arg0: i32) -> (i32, i32) {
    %c0_i32 = arith.constant 0 : i32
    %c0_i32_0 = arith.constant 0 : i32
    return %arg0, %c0_i32 : i32, i32
  }
  func.func @transform_1(%arg0: i32) -> (i32, i32) {
    %c0_i32 = arith.constant 0 : i32
    %c0_i32_0 = arith.constant 0 : i32
    %c0_i32_1 = arith.constant 0 : i32
    return %c0_i32, %c0_i32_0 : i32, i32
  }
  func.func @transform_2(%arg0: i32) -> (i32, i32) {
    %c0_i32 = arith.constant 0 : i32
    %c0_i32_0 = arith.constant 0 : i32
    return %arg0, %c0_i32 : i32, i32
  }
}

</mosaic_0001>

<bundles_post_ra>
// kernel: cvae_forward.1
= control target key start
LH: loop header
LB: loop body
LE: loop exit
PB: predicated region body
PF: predicated region fallthrough
CT: control target
= control target key end

     0   :  { %7 = vsyncpa [#allocation3], 0  ;;  %s4198_s9 = smov [#allocation2]   ;;  %s4881_s0 = inlined_call_operand.vmem [shape: f32[8,32], index: 0, kind: input, shape index: {}]   ;;  %s4882_s1 = inlined_call_operand.hbm [shape: f32[224,128], index: 1, kind: input, shape index: {}]   ;;  %s4883_s2 = inlined_call_operand.vmem [shape: f32[8,32], index: 2, kind: output, shape index: {}]  }
   0x1   :  { %s15_s10 = sshll.u32 %s4198_s9, 4  ;;  %s16_s10 = int_to_ptr.vmem [resolvable:$true] %s15_s10 }
   0x2   :  { %s4184_s11 = scalar_lea.vmem %s16_s10, 3584  ;;  %p4189_p1 = scmp.lt.s32.totalorder %s16_s10, %s16_s10 }
   0x3   :  { %p4185_p0 = scmp.ne.s32.totalorder %s16_s10, %s4184_s11  ;;  %p4190_p2 = scmp.lt.s32.totalorder %s4184_s11, %s4184_s11 }
   0x5   :  { %p4191_p3 = por %p4190_p2, %p4189_p1 }
   0x7   :  { %p4192_p4 = pnand %p4191_p3, %p4185_p0 }
   0x9   :  { %4195 = shalt.err (!%p4192_p4)
}
   0xa   :  { %s4199_s12 = smov 128   ;;  %s4200_s13 = smov 8  }
   0xb   :  { %21 = dma.hbm_to_vmem [thread:$0]  %s4882_s1, 3584, %s16_s10, [#allocation3], %s4199_s12, %s4199_s12, %s4200_s13  }
   0xc   :  { %4196 = dma.done.wait [#allocation3], 3584  }
   0xd   :  { %4197 = vsyncadd [#allocation3], 4294963712  ;;  %v4201_v0 = vmov 0.0   ;;  %vm4202_vm0 = vmmov 0   ;;  %vm32_vm1 = vcmask 64512   ;;  %v27_v1 = vld [vmem:[#allocation2] sm:$0xff]  ;;  %v28_v62 = vlaneseq }
   0xe   :  { %3716 = vmatprep.subr.mxu0 %v4201_v0  ;;  %3721 = vmatprep.subr.mxu1 %v4201_v0  ;;  %v4233_v2 = vld [vmem:[%s4881_s0] sm:$0xff]  ;;  %v67_v3 = vand.u32 4294901760, %v27_v1  ;;  %v489_v16 = vld [vmem:[#allocation2 + $0x38] sm:$0xff]  ;;  %v488_v19 = vld [vmem:[#allocation2 + $0x30] sm:$0xff]  ;;  %vm495_vm2 = vcmask 523264   ;;  %vm1045_vm3 = vcmask 261120  }
   0xf   :  { %3718 = vmatprep.mubr.msk.f32.mxu0 %vm4202_vm0, %v4201_v0  ;;  %3723 = vmatprep.mubr.msk.f32.mxu1 %vm4202_vm0, %v4201_v0  ;;  %v34_v4 = vsel %vm32_vm1, %v4233_v2, 0  ;;  %v490_v14 = vld [vmem:[#allocation2 + $0x40] sm:$0xff]  ;;  %v4260_v18 = vand.u32 4294901760, %v489_v16  ;;  %v4268_v22 = vand.u32 4294901760, %v488_v19  ;;  %v487_v23 = vld [vmem:[#allocation2 + $0x28] sm:$0xff]  ;;  %v485_v34 = vld [vmem:[#allocation2 + $0x18] sm:$0xff] }
  0x10   :  { %v102_v5 = vand.u32 4294901760, %v34_v4  ;;  %3717 = vmatpush3.msra.mxu0 %v67_v3  ;;  %v144_v6 = vsub.f32 %v27_v1, %v67_v3  ;;  %v4255_v15 = vand.u32 4294901760, %v490_v14  ;;  %v4279_v27 = vand.u32 4294901760, %v487_v23  ;;  %v486_v28 = vld [vmem:[#allocation2 + $0x20] sm:$0xff]  ;;  %v484_v40 = vld [vmem:[#allocation2 + $0x10] sm:$0xff]  ;;  %v483_v46 = vld [vmem:[#allocation2 + $0x8] sm:$0xff] }
  0x11   :  { %3726 = vmatprep.subr.mxu0 %v4201_v0  ;;  %v4266_v21 = vsub.f32 %v489_v16, %v4260_v18  ;;  %v4277_v26 = vsub.f32 %v488_v19, %v4268_v22  ;;  %v4291_v33 = vand.u32 4294901760, %v486_v28  ;;  %v4298_v38 = vand.u32 4294901760, %v485_v34  ;;  %s4203_s0 = smov 112   ;;  %s4204_s1 = smov 120  }
  0x12   :  { %v103_v7 = vsub.f32 %v34_v4, %v102_v5  ;;  %v145_v8 = vand.u32 4294901760, %v144_v6  ;;  %v4258_v17 = vsub.f32 %v490_v14, %v4255_v15  ;;  %v4288_v32 = vsub.f32 %v487_v23, %v4279_v27  ;;  %1545 = vrot.lane.b32.xlu0 %v4233_v2, %s4203_s0 }
  0x13   :  { %v608_v25 = vand.u32 4294901760, %v4266_v21  ;;  %v615_v31 = vand.u32 4294901760, %v4277_v26  ;;  %v4302_v39 = vsub.f32 %v486_v28, %v4291_v33  ;;  %v4309_v43 = vsub.f32 %v485_v34, %v4298_v38 }
  0x14   :  { %v104_v9 = vand.u32 4294901760, %v103_v7  ;;  %v146_v10 = vsub.f32 %v144_v6, %v145_v8  ;;  %v601_v20 = vand.u32 4294901760, %v4258_v17  ;;  %v622_v37 = vand.u32 4294901760, %v4288_v32 }
  0x15   :  { %v609_v30 = vsub.f32 %v4266_v21, %v608_v25  ;;  %v616_v36 = vsub.f32 %v4277_v26, %v615_v31  ;;  %v4311_v44 = vand.u32 4294901760, %v484_v40  ;;  %v629_v45 = vand.u32 4294901760, %v4302_v39 }
  0x16   :  { %v105_v11 = vsub.f32 %v103_v7, %v104_v9  ;;  %v147_v12 = vand.u32 4294901760, %v146_v10  ;;  %v602_v24 = vsub.f32 %v4258_v17, %v601_v20  ;;  %v623_v42 = vsub.f32 %v4288_v32, %v622_v37 }
  0x17   :  { %v610_v35 = vand.u32 4294901760, %v609_v30  ;;  %v617_v41 = vand.u32 4294901760, %v616_v36  ;;  %v636_v48 = vand.u32 4294901760, %v4309_v43  ;;  %v4319_v49 = vsub.f32 %v484_v40, %v4311_v44 }
  0x18   :  { %v106_v13 = vand.u32 4294901760, %v105_v11  ;;  %3722 = vmatpush3.msra.mxu1 %v147_v12  ;;  %v603_v29 = vand.u32 4294901760, %v602_v24  ;;  %v624_v47 = vand.u32 4294901760, %v623_v42  ;;  %v4321_v50 = vand.u32 4294901760, %v483_v46 }
  0x19   :  { %3724 = vmatmul.mubr.f32.vlgmr.msra.gmra.mxu1 %v102_v5  ;;  %3731 = vmatprep.subr.mxu1 %v4201_v0  ;;  %v630_v51 = vsub.f32 %v4302_v39, %v629_v45  ;;  %v637_v52 = vsub.f32 %v4309_v43, %v636_v48  ;;  %v643_v53 = vand.u32 4294901760, %v4319_v49  ;;  %v4351_v63 = vshrl.u32 %v28_v62, 7 }
  0x1a   :  { %3719 = vmatmul.mubr.f32.vlgmr.msra.gmra.mxu0 %v106_v13  ;;  %3732 = vmatpush3.msra.mxu1 %v67_v3  ;;  %v4334_v54 = vsub.f32 %v483_v46, %v4321_v50  ;;  %vm3504_vm4 = vcmask 195584  }
  0x1b   :  { %3727 = vmatpush3.msra.mxu0 %v144_v6  ;;  %3728 = vmatprep.mubr.msk.f32.mxu0 %vm4202_vm0, %v4201_v0  ;;  %v631_v55 = vand.u32 4294901760, %v630_v51  ;;  %v638_v56 = vand.u32 4294901760, %v637_v52  ;;  %v644_v57 = vsub.f32 %v4319_v49, %v643_v53  ;;  %v30_v1 = vsub.s32 0, %v4351_v63 }
  0x1c   :  { %3733 = vmatprep.mubr.msk.f32.mxu1 %vm4202_vm0, %v4201_v0  ;;  %3736 = vmatprep.subr.mxu0 %v4201_v0  ;;  %v650_v58 = vand.u32 4294901760, %v4334_v54 }
  0x1d   :  { %3734 = vmatmul.mubr.f32.vlgmr.msra.gmra.mxu1 %v104_v9  ;;  %3741 = vmatprep.subr.mxu1 %v4201_v0  ;;  %v645_v59 = vand.u32 4294901760, %v644_v57 }
  0x1e   :  { %3729 = vmatmul.mubr.f32.vlgmr.msra.gmra.mxu0 %v103_v7  ;;  %3742 = vmatpush3.msra.mxu1 %v67_v3  ;;  %v651_v60 = vsub.f32 %v4334_v54, %v650_v58  ;;  %v4354_v3 = vld [vmem:[#allocation2 + $0xd8] sm:$0xff] }
  0x1f   :  { %3737 = vmatpush3.msra.mxu0 %v145_v8  ;;  %3738 = vmatprep.mubr.msk.f32.mxu0 %vm4202_vm0, %v4201_v0  ;;  %v31_v4 = vrot.slane %v4354_v3, %v30_v1 }
  0x20   :  { %3743 = vmatprep.mubr.msk.f32.mxu1 %vm4202_vm0, %v4201_v0  ;;  %3765 = vmatprep.subr.mxu1 %v4201_v0  ;;  %v652_v61 = vand.u32 4294901760, %v651_v60  ;;  %v493_v60 = vsub.s32 1, %v4351_v63 }
  0x21   :  { %3744 = vmatmul.mubr.f32.vlgmr.msra.gmra.mxu1 %v102_v5  ;;  %3746 = vmatprep.subr.mxu0 %v4201_v0 }
  0x22   :  { %3739 = vmatmul.mubr.f32.vlgmr.msra.gmra.mxu0 %v102_v5  ;;  %3781 = vmatprep.mubr.msk.f32.mxu1 %vm4202_vm0, %v4201_v0  ;;  %v494_v62 = vrot.slane %v4354_v3, %v493_v60 }
  0x23   :  { %3762 = vmatprep.mubr.msk.f32.mxu0 %vm4202_vm0, %v4201_v0  ;;  %3747 = vmatpush3.msra.mxu0 %v4255_v15 }
  0x24   :  { %3748 = vmatprep.subr.mxu0 %v4201_v0  ;;  %3766 = vmatpush3.msra.mxu1 %v603_v29 }
  0x25   :  { %3749 = vmatpush3.msra.mxu0 %v4260_v18  ;;  %3767 = vmatprep.subr.mxu1 %v4201_v0 }
  0x26   :  { %3750 = vmatprep.subr.mxu0 %v4201_v0  ;;  %3768 = vmatpush3.msra.mxu1 %v610_v35 }
  0x27   :  { %3751 = vmatpush3.msra.mxu0 %v4268_v22  ;;  %3769 = vmatprep.subr.mxu1 %v4201_v0 }
  0x28   :  { %3752 = vmatprep.subr.mxu0 %v4201_v0  ;;  %3770 = vmatpush3.msra.mxu1 %v617_v41 }
  0x29   :  { %3753 = vmatpush3.msra.mxu0 %v4279_v27  ;;  %3771 = vmatprep.subr.mxu1 %v4201_v0 }
  0x2a   :  { %3754 = vmatprep.subr.mxu0 %v4201_v0  ;;  %3772 = vmatpush3.msra.mxu1 %v624_v47 }
  0x2b   :  { %3755 = vmatpush3.msra.mxu0 %v4291_v33  ;;  %3773 = vmatprep.subr.mxu1 %v4201_v0 }
  0x2c   :  { %3756 = vmatprep.subr.mxu0 %v4201_v0  ;;  %3774 = vmatpush3.msra.mxu1 %v631_v55 }
  0x2d   :  { %3757 = vmatpush3.msra.mxu0 %v4298_v38  ;;  %3775 = vmatprep.subr.mxu1 %v4201_v0 }
  0x2e   :  { %3758 = vmatprep.subr.mxu0 %v4201_v0  ;;  %3776 = vmatpush3.msra.mxu1 %v638_v56 }
  0x2f   :  { %3759 = vmatpush3.msra.mxu0 %v4311_v44  ;;  %3777 = vmatprep.subr.mxu1 %v4201_v0 }
  0x30   :  { %3760 = vmatprep.subr.mxu0 %v4201_v0  ;;  %3778 = vmatpush3.msra.mxu1 %v645_v59 }
  0x31   :  { %3761 = vmatpush3.msra.mxu0 %v4321_v50  ;;  %3779 = vmatprep.subr.mxu1 %v4201_v0 }
  0x32   :  { %3784 = vmatprep.subr.mxu0 %v4201_v0  ;;  %3780 = vmatpush3.msra.mxu1 %v652_v61 }
  0x33   :  { %3803 = vmatprep.subr.mxu1 %v4201_v0 }
  0xd9   :  { %v184_v6 = vpop.f32.mrf.mxu1 }
  0xda   :  { %v108_v5 = vpop.f32.mrf.mxu0 }
  0xdb   :  { %v109_v7 = vadd.f32 %v108_v5, %v31_v4  ;;  %v3725_v9 = vpop.f32.mrf.mxu1 }
  0xdc   :  { %v3720_v8 = vpop.f32.mrf.mxu0 }
  0xdd   :  { %v185_v10 = vadd.f32 %v184_v6, %v109_v7  ;;  %v332_v12 = vpop.f32.mrf.mxu1 }
  0xde   :  { %v258_v11 = vpop.f32.mrf.mxu0 }
  0xdf   :  { %v259_v13 = vadd.f32 %v258_v11, %v185_v10  ;;  %v3735_v16 = vpop.f32.mrf.mxu1 }
  0xe0   :  { %v3730_v14 = vpop.f32.mrf.mxu0 }
  0xe1   :  { %v333_v19 = vadd.f32 %v332_v12, %v259_v13  ;;  %v478_v24 = vpop.f32.mrf.mxu1 }
  0xe2   :  { %v406_v23 = vpop.f32.mrf.mxu0 }
  0xe3   :  { %v407_v28 = vadd.f32 %v406_v23, %v333_v19  ;;  %v3745_v30 = vpop.f32.mrf.mxu1 }
  0xe4   :  { %v3740_v29 = vpop.f32.mrf.mxu0 }
  0xe5   :  { %v479_v34 = vadd.f32 %v478_v24, %v407_v28 }
  0xe7   :  { %v482_v35 = vmax.f32 %v479_v34, 0.0 }
  0xe9   :  { %v497_v36 = vsel %vm495_vm2, %v482_v35, 0  ;;  %v1043_v35 = vsub.s32 2, %v4351_v63 }
  0xea   :  { %v4358_v40 = vand.u32 4294901760, %v497_v36 }
  0xec   :  { %v573_v41 = vsub.f32 %v497_v36, %v4358_v40  ;;  %3782 = vmatmul.mubr.f32.vlgmr.msra.gmra.mxu1 %v4358_v40  ;;  %v1546_v36 = vpop.permute.xlu0 %1545 }
  0xed   :  { %3804 = vmatpush3.msra.mxu1 %v4255_v15  ;;  %3819 = vmatprep.mubr.msk.f32.mxu1 %vm4202_vm0, %v4201_v0 }
  0xee   :  { %v574_v42 = vand.u32 4294901760, %v573_v41  ;;  %3805 = vmatprep.subr.mxu1 %v4201_v0 }
  0xef   :  { %3806 = vmatpush3.msra.mxu1 %v4260_v18 }
  0xf0   :  { %3807 = vmatprep.subr.mxu1 %v4201_v0  ;;  %v575_v46 = vsub.f32 %v573_v41, %v574_v42 }
  0xf1   :  { %3808 = vmatpush3.msra.mxu1 %v4268_v22 }
  0xf2   :  { %3809 = vmatprep.subr.mxu1 %v4201_v0  ;;  %v576_v47 = vand.u32 4294901760, %v575_v46 }
  0xf3   :  { %3810 = vmatpush3.msra.mxu1 %v4279_v27 }
  0xf4   :  { %3811 = vmatprep.subr.mxu1 %v4201_v0  ;;  %3763 = vmatmul.mubr.f32.vlgmr.msra.gmra.mxu0 %v576_v47  ;;  %v1544_v47 = vld [vmem:[#allocation2 + $0x70] sm:$0xff] }
  0xf5   :  { %3785 = vmatpush3.msra.mxu0 %v4258_v17  ;;  %3812 = vmatpush3.msra.mxu1 %v4291_v33 }
  0xf6   :  { %3786 = vmatprep.subr.mxu0 %v4201_v0  ;;  %3813 = vmatprep.subr.mxu1 %v4201_v0 }
  0xf7   :  { %3787 = vmatpush3.msra.mxu0 %v4266_v21  ;;  %3814 = vmatpush3.msra.mxu1 %v4298_v38 }
  0xf8   :  { %3788 = vmatprep.subr.mxu0 %v4201_v0  ;;  %3815 = vmatprep.subr.mxu1 %v4201_v0 }
  0xf9   :  { %3789 = vmatpush3.msra.mxu0 %v4277_v26  ;;  %3816 = vmatpush3.msra.mxu1 %v4311_v44 }
  0xfa   :  { %3790 = vmatprep.subr.mxu0 %v4201_v0  ;;  %3817 = vmatprep.subr.mxu1 %v4201_v0 }
  0xfb   :  { %3791 = vmatpush3.msra.mxu0 %v4288_v32  ;;  %3818 = vmatpush3.msra.mxu1 %v4321_v50 }
  0xfc   :  { %3792 = vmatprep.subr.mxu0 %v4201_v0  ;;  %3820 = vmatmul.mubr.f32.vlgmr.msra.gmra.mxu1 %v574_v42 }
  0xfd   :  { %3841 = vmatprep.subr.mxu1 %v4201_v0  ;;  %3793 = vmatpush3.msra.mxu0 %v4302_v39 }
  0xfe   :  { %3842 = vmatpush3.msra.mxu1 %v4255_v15  ;;  %3794 = vmatprep.subr.mxu0 %v4201_v0  ;;  %v1040_v15 = vld [vmem:[#allocation2 + $0x60] sm:$0xff] }
  0xff   :  { %3843 = vmatprep.subr.mxu1 %v4201_v0  ;;  %3795 = vmatpush3.msra.mxu0 %v4309_v43  ;;  %v4448_v17 = vand.u32 4294901760, %v1040_v15 }
 0x100   :  { %3844 = vmatpush3.msra.mxu1 %v4260_v18  ;;  %3796 = vmatprep.subr.mxu0 %v4201_v0  ;;  %v1039_v18 = vld [vmem:[#allocation2 + $0x58] sm:$0xff] }
 0x101   :  { %3845 = vmatprep.subr.mxu1 %v4201_v0  ;;  %3797 = vmatpush3.msra.mxu0 %v4319_v49  ;;  %v4453_v21 = vand.u32 4294901760, %v1039_v18 }
 0x102   :  { %3846 = vmatpush3.msra.mxu1 %v4268_v22  ;;  %3798 = vmatprep.subr.mxu0 %v4201_v0  ;;  %v1038_v22 = vld [vmem:[#allocation2 + $0x50] sm:$0xff] }
 0x103   :  { %3847 = vmatprep.subr.mxu1 %v4201_v0  ;;  %3799 = vmatpush3.msra.mxu0 %v4334_v54  ;;  %v4459_v26 = vsub.f32 %v1039_v18, %v4453_v21  ;;  %v1044_v18 = vrot.slane %v4354_v3, %v1043_v35 }
 0x104   :  { %3800 = vmatprep.mubr.msk.f32.mxu0 %vm4202_vm0, %v4201_v0  ;;  %3848 = vmatpush3.msra.mxu1 %v4279_v27  ;;  %v4461_v27 = vand.u32 4294901760, %v1038_v22 }
 0x105   :  { %3801 = vmatmul.mubr.f32.vlgmr.msra.gmra.mxu0 %v573_v41  ;;  %3822 = vmatprep.subr.mxu0 %v4201_v0  ;;  %v1547_v41 = vsel %vm32_vm1, %v1546_v36, 0 }
 0x106   :  { %3849 = vmatprep.subr.mxu1 %v4201_v0  ;;  %3823 = vmatpush3.msra.mxu0 %v601_v20  ;;  %v4451_v20 = vsub.f32 %v1040_v15, %v4448_v17  ;;  %v1615_v46 = vand.u32 4294901760, %v1547_v41 }
 0x107   :  { %3850 = vmatpush3.msra.mxu1 %v4291_v33  ;;  %3824 = vmatprep.subr.mxu0 %v4201_v0  ;;  %v1162_v33 = vand.u32 4294901760, %v4459_v26 }
 0x108   :  { %3851 = vmatprep.subr.mxu1 %v4201_v0  ;;  %3825 = vmatpush3.msra.mxu0 %v608_v25  ;;  %v1155_v25 = vand.u32 4294901760, %v4451_v20 }
 0x109   :  { %3852 = vmatpush3.msra.mxu1 %v4298_v38  ;;  %3826 = vmatprep.subr.mxu0 %v4201_v0  ;;  %v1163_v43 = vsub.f32 %v4459_v26, %v1162_v33 }
 0x10a   :  { %3853 = vmatprep.subr.mxu1 %v4201_v0  ;;  %3827 = vmatpush3.msra.mxu0 %v615_v31  ;;  %v1037_v31 = vld [vmem:[#allocation2 + $0x48] sm:$0xff]  ;;  %v1156_v32 = vsub.f32 %v4451_v20, %v1155_v25 }
 0x10b   :  { %3854 = vmatpush3.msra.mxu1 %v4311_v44  ;;  %3828 = vmatprep.subr.mxu0 %v4201_v0  ;;  %v4472_v38 = vand.u32 4294901760, %v1037_v31 }
 0x10c   :  { %3855 = vmatprep.subr.mxu1 %v4201_v0  ;;  %3829 = vmatpush3.msra.mxu0 %v622_v37  ;;  %v4470_v37 = vsub.f32 %v1038_v22, %v4461_v27  ;;  %v1157_v39 = vand.u32 4294901760, %v1156_v32 }
 0x10d   :  { %3856 = vmatpush3.msra.mxu1 %v4321_v50  ;;  %3857 = vmatprep.mubr.msk.f32.mxu1 %vm4202_vm0, %v4201_v0 }
 0x10e   :  { %3830 = vmatprep.subr.mxu0 %v4201_v0  ;;  %3858 = vmatmul.mubr.f32.vlgmr.msra.gmra.mxu1 %v4358_v40  ;;  %v1169_v44 = vand.u32 4294901760, %v4470_v37 }
 0x10f   :  { %3831 = vmatpush3.msra.mxu0 %v629_v45  ;;  %3838 = vmatprep.mubr.msk.f32.mxu0 %vm4202_vm0, %v4201_v0  ;;  %v4481_v45 = vsub.f32 %v1037_v31, %v4472_v38 }
 0x110   :  { %3832 = vmatprep.subr.mxu0 %v4201_v0  ;;  %3871 = vmatprep.subr.mxu1 %v4201_v0  ;;  %v1170_v49 = vsub.f32 %v4470_v37, %v1169_v44 }
 0x111   :  { %3833 = vmatpush3.msra.mxu0 %v636_v48  ;;  %3879 = vmatprep.mubr.msk.f32.mxu1 %vm4202_vm0, %v4201_v0  ;;  %v1164_v48 = vand.u32 4294901760, %v1163_v43  ;;  %v1176_v50 = vand.u32 4294901760, %v4481_v45 }
 0x112   :  { %3834 = vmatprep.subr.mxu0 %v4201_v0  ;;  %3872 = vmatpush3.msra.mxu1 %v1157_v39  ;;  %v1171_v51 = vand.u32 4294901760, %v1170_v49 }
 0x113   :  { %3835 = vmatpush3.msra.mxu0 %v643_v53  ;;  %3873 = vmatprep.subr.mxu1 %v4201_v0  ;;  %v1177_v52 = vsub.f32 %v4481_v45, %v1176_v50 }
 0x114   :  { %3836 = vmatprep.subr.mxu0 %v4201_v0  ;;  %3874 = vmatpush3.msra.mxu1 %v1164_v48 }
 0x115   :  { %3837 = vmatpush3.msra.mxu0 %v650_v58  ;;  %3875 = vmatprep.subr.mxu1 %v4201_v0  ;;  %v1178_v53 = vand.u32 4294901760, %v1177_v52 }
 0x116   :  { %3839 = vmatmul.mubr.f32.vlgmr.msra.gmra.mxu0 %v4358_v40  ;;  %3860 = vmatprep.subr.mxu0 %v4201_v0 }
 0x117   :  { %3868 = vmatprep.mubr.msk.f32.mxu0 %vm4202_vm0, %v4201_v0  ;;  %3861 = vmatpush3.msra.mxu0 %v4448_v17 }
 0x118   :  { %3862 = vmatprep.subr.mxu0 %v4201_v0  ;;  %3876 = vmatpush3.msra.mxu1 %v1171_v51 }
 0x119   :  { %3863 = vmatpush3.msra.mxu0 %v4453_v21  ;;  %3877 = vmatprep.subr.mxu1 %v4201_v0 }
 0x11a   :  { %3864 = vmatprep.subr.mxu0 %v4201_v0  ;;  %3878 = vmatpush3.msra.mxu1 %v1178_v53 }
 0x11b   :  { %3865 = vmatpush3.msra.mxu0 %v4461_v27  ;;  %3893 = vmatprep.subr.mxu1 %v4201_v0 }
 0x11c   :  { %3866 = vmatprep.subr.mxu0 %v4201_v0 }
 0x11d   :  { %3867 = vmatpush3.msra.mxu0 %v4472_v38 }
 0x11e   :  { %3882 = vmatprep.subr.mxu0 %v4201_v0 }
 0x1ac   :  { %v689_v54 = vpop.f32.mrf.mxu1 }
 0x1ae   :  { %v3783_v55 = vpop.f32.mrf.mxu1 }
 0x1af   :  { %v1543_v55 = vld [vmem:[#allocation2 + $0x68] sm:$0xff] }
 0x1b4   :  { %v578_v56 = vpop.f32.mrf.mxu0 }
 0x1b5   :  { %v579_v4 = vadd.f32 %v578_v56, %v494_v62  ;;  %v2029_v56 = vand.u32 4294901760, %v1543_v55 }
 0x1b6   :  { %v3764_v57 = vpop.f32.mrf.mxu0 }
 0x1b7   :  { %v690_v6 = vadd.f32 %v689_v54, %v579_v4 }
 0x1bc   :  { %v858_v58 = vpop.f32.mrf.mxu1 }
 0x1be   :  { %v3821_v59 = vpop.f32.mrf.mxu1 }
 0x1c5   :  { %v777_v61 = vpop.f32.mrf.mxu0 }
 0x1c6   :  { %v778_v8 = vadd.f32 %v777_v61, %v690_v6 }
 0x1c7   :  { %v3802_v1 = vpop.f32.mrf.mxu0 }
 0x1c8   :  { %v859_v9 = vadd.f32 %v858_v58, %v778_v8  ;;  %v2106_v58 = vsub.f32 %v1543_v55, %v2029_v56 }
 0x1ca   :  { %v2107_v59 = vand.u32 4294901760, %v2106_v58 }
 0x1cc   :  { %v2108_v60 = vsub.f32 %v2106_v58, %v2107_v59 }
 0x1ce   :  { %v1032_v5 = vpop.f32.mrf.mxu1  ;;  %v2109_v61 = vand.u32 4294901760, %v2108_v60 }
 0x1d0   :  { %v3859_v7 = vpop.f32.mrf.mxu1 }
 0x1d6   :  { %v953_v10 = vpop.f32.mrf.mxu0 }
 0x1d7   :  { %v954_v11 = vadd.f32 %v953_v10, %v859_v9 }
 0x1d8   :  { %v3840_v12 = vpop.f32.mrf.mxu0 }
 0x1d9   :  { %v1033_v13 = vadd.f32 %v1032_v5, %v954_v11 }
 0x1db   :  { %v1036_v14 = vmax.f32 %v1033_v13, 0.0 }
 0x1dd   :  { %v1047_v16 = vsel %vm1045_vm3, %v1036_v14, 0 }
 0x1de   :  { %v1118_v19 = vand.u32 4294901760, %v1047_v16 }
 0x1e0   :  { %v1119_v23 = vsub.f32 %v1047_v16, %v1118_v19  ;;  %3880 = vmatmul.mubr.f32.vlgmr.msra.gmra.mxu1 %v1118_v19 }
 0x1e1   :  { %3894 = vmatpush3.msra.mxu1 %v4448_v17  ;;  %3901 = vmatprep.mubr.msk.f32.mxu1 %vm4202_vm0, %v4201_v0 }
 0x1e2   :  { %3895 = vmatprep.subr.mxu1 %v4201_v0  ;;  %v1120_v24 = vand.u32 4294901760, %v1119_v23 }
 0x1e3   :  { %3896 = vmatpush3.msra.mxu1 %v4453_v21 }
 0x1e4   :  { %3897 = vmatprep.subr.mxu1 %v4201_v0  ;;  %v1121_v28 = vsub.f32 %v1119_v23, %v1120_v24 }
 0x1e5   :  { %3898 = vmatpush3.msra.mxu1 %v4461_v27 }
 0x1e6   :  { %3899 = vmatprep.subr.mxu1 %v4201_v0  ;;  %v1122_v29 = vand.u32 4294901760, %v1121_v28 }
 0x1e7   :  { %3900 = vmatpush3.msra.mxu1 %v4472_v38 }
 0x1e8   :  { %3902 = vmatmul.mubr.f32.vlgmr.msra.gmra.mxu1 %v1120_v24  ;;  %3915 = vmatprep.subr.mxu1 %v4201_v0 }
 0x1e9   :  { %3869 = vmatmul.mubr.f32.vlgmr.msra.gmra.mxu0 %v1122_v29  ;;  %3916 = vmatpush3.msra.mxu1 %v4448_v17  ;;  %v1580_v17 = vand.u32 4294901760, %v1544_v47 }
 0x1ea   :  { %3883 = vmatpush3.msra.mxu0 %v4451_v20  ;;  %3917 = vmatprep.subr.mxu1 %v4201_v0 }
 0x1eb   :  { %3884 = vmatprep.subr.mxu0 %v4201_v0  ;;  %3918 = vmatpush3.msra.mxu1 %v4453_v21  ;;  %v1616_v21 = vsub.f32 %v1547_v41, %v1615_v46  ;;  %v1657_v22 = vsub.f32 %v1544_v47, %v1580_v17 }
 0x1ec   :  { %3885 = vmatpush3.msra.mxu0 %v4459_v26  ;;  %3919 = vmatprep.subr.mxu1 %v4201_v0 }
 0x1ed   :  { %3886 = vmatprep.subr.mxu0 %v4201_v0  ;;  %3920 = vmatpush3.msra.mxu1 %v4461_v27  ;;  %v1658_v26 = vand.u32 4294901760, %v1657_v22 }
 0x1ee   :  { %3887 = vmatpush3.msra.mxu0 %v4470_v37  ;;  %3921 = vmatprep.subr.mxu1 %v4201_v0 }
 0x1ef   :  { %3888 = vmatprep.subr.mxu0 %v4201_v0  ;;  %3890 = vmatprep.mubr.msk.f32.mxu0 %vm4202_vm0, %v4201_v0  ;;  %v1659_v32 = vsub.f32 %v1657_v22, %v1658_v26 }
 0x1f0   :  { %3889 = vmatpush3.msra.mxu0 %v4481_v45  ;;  %3922 = vmatpush3.msra.mxu1 %v4472_v38 }
 0x1f1   :  { %3923 = vmatprep.mubr.msk.f32.mxu1 %vm4202_vm0, %v4201_v0  ;;  %3891 = vmatmul.mubr.f32.vlgmr.msra.gmra.mxu0 %v1119_v23  ;;  %v1660_v39 = vand.u32 4294901760, %v1659_v32 }
 0x1f2   :  { %3904 = vmatprep.subr.mxu0 %v4201_v0  ;;  %3924 = vmatmul.mubr.f32.vlgmr.msra.gmra.mxu1 %v1118_v19 }
 0x1f3   :  { %3905 = vmatpush3.msra.mxu0 %v1155_v25  ;;  %3912 = vmatprep.mubr.msk.f32.mxu0 %vm4202_vm0, %v4201_v0  ;;  %v1617_v25 = vand.u32 4294901760, %v1616_v21 }
 0x1f4   :  { %3906 = vmatprep.subr.mxu0 %v4201_v0  ;;  %3931 = vmatprep.subr.mxu1 %v4201_v0 }
 0x1f5   :  { %3907 = vmatpush3.msra.mxu0 %v1162_v33  ;;  %3933 = vmatprep.mubr.msk.f32.mxu1 %vm4202_vm0, %v4201_v0  ;;  %v1618_v31 = vsub.f32 %v1616_v21, %v1617_v25 }
 0x1f6   :  { %3908 = vmatprep.subr.mxu0 %v4201_v0  ;;  %3932 = vmatpush3.msra.mxu1 %v1660_v39 }
 0x1f7   :  { %3909 = vmatpush3.msra.mxu0 %v1169_v44  ;;  %v1619_v37 = vand.u32 4294901760, %v1618_v31  ;;  %3934 = vmatmul.mubr.f32.vlgmr.msra.gmra.mxu1 %v1615_v46 }
 0x1f8   :  { %3910 = vmatprep.subr.mxu0 %v4201_v0  ;;  %3941 = vmatprep.subr.mxu1 %v4201_v0 }
 0x1f9   :  { %3911 = vmatpush3.msra.mxu0 %v1176_v50  ;;  %3942 = vmatpush3.msra.mxu1 %v1580_v17 }
 0x1fa   :  { %3913 = vmatmul.mubr.f32.vlgmr.msra.gmra.mxu0 %v1118_v19  ;;  %3926 = vmatprep.subr.mxu0 %v4201_v0 }
 0x1fb   :  { %3928 = vmatprep.mubr.msk.f32.mxu0 %vm4202_vm0, %v4201_v0  ;;  %3927 = vmatpush3.msra.mxu0 %v1580_v17 }
 0x1fc   :  { %3936 = vmatprep.subr.mxu0 %v4201_v0  ;;  %3943 = vmatprep.mubr.msk.f32.mxu1 %vm4202_vm0, %v4201_v0 }
 0x1fd   :  { %3951 = vmatprep.subr.mxu1 %v4201_v0  ;;  %3944 = vmatmul.mubr.f32.vlgmr.msra.gmra.mxu1 %v1617_v25 }
 0x1fe   :  { %3929 = vmatmul.mubr.f32.vlgmr.msra.gmra.mxu0 %v1619_v37  ;;  %3952 = vmatpush3.msra.mxu1 %v1580_v17 }
 0x1ff   :  { %3937 = vmatpush3.msra.mxu0 %v1657_v22  ;;  %3938 = vmatprep.mubr.msk.f32.mxu0 %vm4202_vm0, %v4201_v0 }
 0x200   :  { %3946 = vmatprep.subr.mxu0 %v4201_v0  ;;  %3953 = vmatprep.mubr.msk.f32.mxu1 %vm4202_vm0, %v4201_v0 }
 0x201   :  { %3961 = vmatprep.subr.mxu1 %v4201_v0  ;;  %3954 = vmatmul.mubr.f32.vlgmr.msra.gmra.mxu1 %v1615_v46 }
 0x202   :  { %3939 = vmatmul.mubr.f32.vlgmr.msra.gmra.mxu0 %v1616_v21  ;;  %3963 = vmatprep.mubr.msk.f32.mxu1 %vm4202_vm0, %v4201_v0 }
 0x203   :  { %3947 = vmatpush3.msra.mxu0 %v1658_v26  ;;  %3948 = vmatprep.mubr.msk.f32.mxu0 %vm4202_vm0, %v4201_v0  ;;  %v2450_v26 = vld [vmem:[#allocation2 + $0x78] sm:$0xff] }
 0x204   :  { %3956 = vmatprep.subr.mxu0 %v4201_v0  ;;  %3962 = vmatpush3.msra.mxu1 %v2109_v61 }
 0x205   :  { %3971 = vmatprep.subr.mxu1 %v4201_v0 }
 0x206   :  { %3949 = vmatmul.mubr.f32.vlgmr.msra.gmra.mxu0 %v1615_v46  ;;  %v2453_v46 = vld [vmem:[#allocation2 + $0x90] sm:$0xff] }
 0x207   :  { %3958 = vmatprep.mubr.msk.f32.mxu0 %vm4202_vm0, %v4201_v0  ;;  %3957 = vmatpush3.msra.mxu0 %v2029_v56  ;;  %v4590_v47 = vand.u32 4294901760, %v2453_v46 }
 0x208   :  { %3966 = vmatprep.subr.mxu0 %v4201_v0 }
 0x209   :  { %v4593_v17 = vsub.f32 %v2453_v46, %v4590_v47 }
 0x20b   :  { %v2567_v21 = vand.u32 4294901760, %v4593_v17 }
 0x2a0   :  { %v1215_v30 = vpop.f32.mrf.mxu1 }
 0x2a2   :  { %v3881_v34 = vpop.f32.mrf.mxu1 }
 0x2a8   :  { %v1372_v40 = vpop.f32.mrf.mxu1 }
 0x2a9   :  { %v1124_v42 = vpop.f32.mrf.mxu0 }
 0x2aa   :  { %v3903_v15 = vpop.f32.mrf.mxu1  ;;  %v1125_v27 = vadd.f32 %v1124_v42, %v1044_v18 }
 0x2ab   :  { %v3870_v20 = vpop.f32.mrf.mxu0  ;;  %v2452_v15 = vld [vmem:[#allocation2 + $0x88] sm:$0xff] }
 0x2ac   :  { %v1216_v43 = vadd.f32 %v1215_v30, %v1125_v27  ;;  %v4595_v18 = vand.u32 4294901760, %v2452_v15  ;;  %v2451_v20 = vld [vmem:[#allocation2 + $0x80] sm:$0xff]  ;;  %v2568_v27 = vsub.f32 %v4593_v17, %v2567_v21 }
 0x2ad   :  { %v4603_v25 = vand.u32 4294901760, %v2451_v20 }
 0x2ae   :  { %v4601_v22 = vsub.f32 %v2452_v15, %v4595_v18  ;;  %v2569_v37 = vand.u32 4294901760, %v2568_v27  ;;  %v2949_v27 = vld [vmem:[#allocation2 + $0xa8] sm:$0xff] }
 0x2af   :  { %v4612_v32 = vsub.f32 %v2451_v20, %v4603_v25 }
 0x2b0   :  { %v2574_v31 = vand.u32 4294901760, %v4601_v22 }
 0x2b1   :  { %v1295_v33 = vpop.f32.mrf.mxu0  ;;  %v2581_v39 = vand.u32 4294901760, %v4612_v32 }
 0x2b2   :  { %v1530_v38 = vpop.f32.mrf.mxu1  ;;  %v1296_v48 = vadd.f32 %v1295_v33, %v1216_v43  ;;  %v4614_v33 = vand.u32 4294901760, %v2450_v26 }
 0x2b3   :  { %v3892_v44 = vpop.f32.mrf.mxu0 }
 0x2b4   :  { %v3925_v45 = vpop.f32.mrf.mxu1  ;;  %v1373_v49 = vadd.f32 %v1372_v40, %v1296_v48  ;;  %v4623_v43 = vsub.f32 %v2450_v26, %v4614_v33 }
 0x2b5   :  { %v2582_v45 = vsub.f32 %v4612_v32, %v2581_v39 }
 0x2b6   :  { %v2588_v48 = vand.u32 4294901760, %v4623_v43 }
 0x2b7   :  { %v1697_v12 = vpop.f32.mrf.mxu1 }
 0x2b9   :  { %v3935_v16 = vpop.f32.mrf.mxu1 }
 0x2ba   :  { %v1455_v50 = vpop.f32.mrf.mxu0 }
 0x2bb   :  { %v1456_v51 = vadd.f32 %v1455_v50, %v1373_v49  ;;  %v2583_v49 = vand.u32 4294901760, %v2582_v45  ;;  %v2589_v50 = vsub.f32 %v4623_v43, %v2588_v48 }
 0x2bc   :  { %v3914_v52 = vpop.f32.mrf.mxu0 }
 0x2bd   :  { %v1531_v53 = vadd.f32 %v1530_v38, %v1456_v51  ;;  %v1845_v24 = vpop.f32.mrf.mxu1  ;;  %v2575_v38 = vsub.f32 %v4601_v22, %v2574_v31  ;;  %v2590_v51 = vand.u32 4294901760, %v2589_v50  ;;  %v2947_v50 = vld [vmem:[#allocation2 + $0x98] sm:$0xff] }
 0x2be   :  { %v1621_v11 = vpop.f32.mrf.mxu0 }
 0x2bf   :  { %v1534_v54 = vmul.f32 0.5, %v1531_v53  ;;  %3500 = vrot.lane.b32.xlu1 %v1531_v53, %s4200_s13  ;;  %v1698_v14 = vadd.f32 %v1697_v12, %v1621_v11  ;;  %v3945_v30 = vpop.f32.mrf.mxu1  ;;  %v2576_v44 = vand.u32 4294901760, %v2575_v38 }
 0x2c0   :  { %v3930_v13 = vpop.f32.mrf.mxu0 }
 0x2c1   :  { %v1535_v57 = vmul.f32 1.442695, %v1534_v54  ;;  %v1991_v36 = vpop.f32.mrf.mxu1 }
 0x2c2   :  { %v1771_v19 = vpop.f32.mrf.mxu0 }
 0x2c3   :  { %4173 = vpow2.f32 %v1535_v57  ;;  %v1772_v23 = vadd.f32 %v1771_v19, %v1698_v14  ;;  %v3955_v42 = vpop.f32.mrf.mxu1 }
 0x2c4   :  { %v3940_v28 = vpop.f32.mrf.mxu0  ;;  %v2951_v42 = vld [vmem:[#allocation2 + $0xb8] sm:$0xff] }
 0x2c5   :  { %v1846_v29 = vadd.f32 %v1845_v24, %v1772_v23  ;;  %v2954_v24 = vld [vmem:[#allocation2 + $0xd0] sm:$0xff] }
 0x2c6   :  { %v1919_v34 = vpop.f32.mrf.mxu0  ;;  %v4689_v28 = vand.u32 4294901760, %v2954_v24 }
 0x2c7   :  { %v1920_v35 = vadd.f32 %v1919_v34, %v1846_v29  ;;  %v2953_v29 = vld [vmem:[#allocation2 + $0xc8] sm:$0xff] }
 0x2c8   :  { %v3950_v40 = vpop.f32.mrf.mxu0  ;;  %v4692_v30 = vsub.f32 %v2954_v24, %v4689_v28  ;;  %v4694_v34 = vand.u32 4294901760, %v2953_v29 }
 0x2c9   :  { %v1992_v41 = vadd.f32 %v1991_v36, %v1920_v35  ;;  %v2952_v35 = vld [vmem:[#allocation2 + $0xc0] sm:$0xff] }
 0x2ca   :  { %v3064_v36 = vand.u32 4294901760, %v4692_v30  ;;  %v4700_v40 = vsub.f32 %v2953_v29, %v4694_v34 }
 0x2cc   :  { %v3065_v46 = vsub.f32 %v4692_v30, %v3064_v36 }
 0x2ce   :  { %v3066_v20 = vand.u32 4294901760, %v3065_v46 }
 0x2d0   :  { %v4174_v62 = vpop.eup %4173 }
 0x2d1   :  { %v1537_v1 = vmul.f32 %v4174_v62, %v4233_v2 }
 0x2d3   :  { %1539 = vrot.lane.b32.xlu0 %v1537_v1, %s4204_s1 }
 0x345   :  { %v1540_v4 = vpop.permute.xlu0 %1539 }
 0x346   :  { %v1542_v5 = vadd.f32 %v1540_v4, %v1531_v53  ;;  %v2446_v4 = vsub.s32 3, %v4351_v63 }
 0x348   :  { %v1996_v6 = vsel %vm32_vm1, %v1542_v5, 0 }
 0x349   :  { %v2064_v7 = vand.u32 4294901760, %v1996_v6 }
 0x34b   :  { %v2065_v8 = vsub.f32 %v1996_v6, %v2064_v7  ;;  %3964 = vmatmul.mubr.f32.vlgmr.msra.gmra.mxu1 %v2064_v7 }
 0x34c   :  { %3972 = vmatpush3.msra.mxu1 %v2029_v56  ;;  %3973 = vmatprep.mubr.msk.f32.mxu1 %vm4202_vm0, %v4201_v0 }
 0x34d   :  { %v2066_v9 = vand.u32 4294901760, %v2065_v8  ;;  %3981 = vmatprep.subr.mxu1 %v4201_v0 }
 0x34f   :  { %3974 = vmatmul.mubr.f32.vlgmr.msra.gmra.mxu1 %v2066_v9  ;;  %v2067_v10 = vsub.f32 %v2065_v8, %v2066_v9  ;;  %v2447_v9 = vrot.slane %v4354_v3, %v2446_v4 }
 0x350   :  { %3982 = vmatpush3.msra.mxu1 %v2029_v56  ;;  %3983 = vmatprep.mubr.msk.f32.mxu1 %vm4202_vm0, %v4201_v0 }
 0x351   :  { %v2068_v2 = vand.u32 4294901760, %v2067_v10  ;;  %3997 = vmatprep.subr.mxu1 %v4201_v0 }
 0x353   :  { %3959 = vmatmul.mubr.f32.vlgmr.msra.gmra.mxu0 %v2068_v2  ;;  %3984 = vmatmul.mubr.f32.vlgmr.msra.gmra.mxu1 %v2064_v7 }
 0x354   :  { %3967 = vmatpush3.msra.mxu0 %v2106_v58  ;;  %3968 = vmatprep.mubr.msk.f32.mxu0 %vm4202_vm0, %v4201_v0 }
 0x355   :  { %3976 = vmatprep.subr.mxu0 %v4201_v0  ;;  %4005 = vmatprep.mubr.msk.f32.mxu1 %vm4202_vm0, %v4201_v0 }
 0x356   :  { %3998 = vmatpush3.msra.mxu1 %v2569_v37  ;;  %v4732_v37 = vand.u32 4294901760, %v2949_v27 }
 0x357   :  { %3969 = vmatmul.mubr.f32.vlgmr.msra.gmra.mxu0 %v2065_v8  ;;  %3999 = vmatprep.subr.mxu1 %v4201_v0 }
 0x358   :  { %3977 = vmatpush3.msra.mxu0 %v2107_v59  ;;  %3978 = vmatprep.mubr.msk.f32.mxu0 %vm4202_vm0, %v4201_v0  ;;  %v4743_v45 = vsub.f32 %v2949_v27, %v4732_v37 }
 0x359   :  { %3986 = vmatprep.subr.mxu0 %v4201_v0  ;;  %4000 = vmatpush3.msra.mxu1 %v2576_v44 }
 0x35a   :  { %4001 = vmatprep.subr.mxu1 %v4201_v0 }
 0x35b   :  { %3979 = vmatmul.mubr.f32.vlgmr.msra.gmra.mxu0 %v2064_v7  ;;  %4002 = vmatpush3.msra.mxu1 %v2583_v49 }
 0x35c   :  { %3994 = vmatprep.mubr.msk.f32.mxu0 %vm4202_vm0, %v4201_v0  ;;  %3987 = vmatpush3.msra.mxu0 %v4590_v47 }
 0x35d   :  { %3988 = vmatprep.subr.mxu0 %v4201_v0  ;;  %4003 = vmatprep.subr.mxu1 %v4201_v0 }
 0x35e   :  { %3989 = vmatpush3.msra.mxu0 %v4595_v18  ;;  %4004 = vmatpush3.msra.mxu1 %v2590_v51 }
 0x35f   :  { %3990 = vmatprep.subr.mxu0 %v4201_v0  ;;  %4019 = vmatprep.subr.mxu1 %v4201_v0 }
 0x360   :  { %3991 = vmatpush3.msra.mxu0 %v4603_v25 }
 0x361   :  { %3992 = vmatprep.subr.mxu0 %v4201_v0 }
 0x362   :  { %3993 = vmatpush3.msra.mxu0 %v4614_v33 }
 0x363   :  { %4008 = vmatprep.subr.mxu0 %v4201_v0 }
 0x40b   :  { %v2146_v52 = vpop.f32.mrf.mxu1 }
 0x40d   :  { %v3965_v53 = vpop.f32.mrf.mxu1 }
 0x40f   :  { %v2294_v54 = vpop.f32.mrf.mxu1 }
 0x411   :  { %v3975_v55 = vpop.f32.mrf.mxu1 }
 0x413   :  { %v2070_v56 = vpop.f32.mrf.mxu0  ;;  %v2440_v57 = vpop.f32.mrf.mxu1 }
 0x414   :  { %v2071_v58 = vadd.f32 %v2070_v56, %v1992_v41  ;;  %v4702_v41 = vand.u32 4294901760, %v2952_v35 }
 0x415   :  { %v3960_v59 = vpop.f32.mrf.mxu0  ;;  %v3985_v60 = vpop.f32.mrf.mxu1 }
 0x416   :  { %v2147_v61 = vadd.f32 %v2146_v52, %v2071_v58  ;;  %v4711_v15 = vsub.f32 %v2952_v35, %v4702_v41  ;;  %v3099_v52 = vand.u32 4294901760, %v4743_v45 }
 0x417   :  { %v2220_v62 = vpop.f32.mrf.mxu0 }
 0x418   :  { %v2221_v1 = vadd.f32 %v2220_v62, %v2147_v61  ;;  %v3100_v56 = vsub.f32 %v4743_v45, %v3099_v52 }
 0x419   :  { %v3970_v5 = vpop.f32.mrf.mxu0 }
 0x41a   :  { %v2295_v6 = vadd.f32 %v2294_v54, %v2221_v1  ;;  %v4755_v54 = vand.u32 4294901760, %v2947_v50  ;;  %v3101_v60 = vand.u32 4294901760, %v3100_v56 }
 0x41b   :  { %v2368_v7 = vpop.f32.mrf.mxu0 }
 0x41c   :  { %v2369_v8 = vadd.f32 %v2368_v7, %v2295_v6  ;;  %v4768_v58 = vsub.f32 %v2947_v50, %v4755_v54 }
 0x41d   :  { %v3980_v10 = vpop.f32.mrf.mxu0 }
 0x41e   :  { %v2441_v2 = vadd.f32 %v2440_v57, %v2369_v8  ;;  %v3113_v62 = vand.u32 4294901760, %v4768_v58  ;;  %v2456_v8 = vsub.s32 4, %v4351_v63 }
 0x420   :  { %v2448_v11 = vadd.f32 %v2447_v9, %v2441_v2  ;;  %v3114_v4 = vsub.f32 %v4768_v58, %v3113_v62 }
 0x422   :  { %v2449_v12 = vmax.f32 %v2448_v11, 0.0  ;;  %v3115_v5 = vand.u32 4294901760, %v3114_v4  ;;  %v4786_v11 = vld [vmem:[#allocation2 + $0xd8] sm:$0xff] }
 0x424   :  { %v2459_v13 = vsel %vm1045_vm3, %v2449_v12, 0  ;;  %v2457_v12 = vrot.slane %v4786_v11, %v2456_v8 }
 0x425   :  { %v2530_v14 = vand.u32 4294901760, %v2459_v13 }
 0x427   :  { %4006 = vmatmul.mubr.f32.vlgmr.msra.gmra.mxu1 %v2530_v14  ;;  %v2531_v16 = vsub.f32 %v2459_v13, %v2530_v14 }
 0x428   :  { %4020 = vmatpush3.msra.mxu1 %v4590_v47  ;;  %4027 = vmatprep.mubr.msk.f32.mxu1 %vm4202_vm0, %v4201_v0 }
 0x429   :  { %4021 = vmatprep.subr.mxu1 %v4201_v0  ;;  %v2532_v19 = vand.u32 4294901760, %v2531_v16 }
 0x42a   :  { %4022 = vmatpush3.msra.mxu1 %v4595_v18 }
 0x42b   :  { %4023 = vmatprep.subr.mxu1 %v4201_v0  ;;  %v2533_v3 = vsub.f32 %v2531_v16, %v2532_v19 }
 0x42c   :  { %4024 = vmatpush3.msra.mxu1 %v4603_v25 }
 0x42d   :  { %4025 = vmatprep.subr.mxu1 %v4201_v0  ;;  %v2534_v23 = vand.u32 4294901760, %v2533_v3 }
 0x42e   :  { %4026 = vmatpush3.msra.mxu1 %v4614_v33 }
 0x42f   :  { %4028 = vmatmul.mubr.f32.vlgmr.msra.gmra.mxu1 %v2532_v19  ;;  %4041 = vmatprep.subr.mxu1 %v4201_v0 }
 0x430   :  { %3995 = vmatmul.mubr.f32.vlgmr.msra.gmra.mxu0 %v2534_v23  ;;  %4042 = vmatpush3.msra.mxu1 %v4590_v47  ;;  %v3071_v47 = vand.u32 4294901760, %v4700_v40 }
 0x431   :  { %4009 = vmatpush3.msra.mxu0 %v4593_v17  ;;  %4043 = vmatprep.subr.mxu1 %v4201_v0  ;;  %v4713_v17 = vand.u32 4294901760, %v2951_v42 }
 0x432   :  { %4010 = vmatprep.subr.mxu0 %v4201_v0  ;;  %4044 = vmatpush3.msra.mxu1 %v4595_v18  ;;  %v2950_v18 = vld [vmem:[#allocation2 + $0xb0] sm:$0xff] }
 0x433   :  { %4011 = vmatpush3.msra.mxu0 %v4601_v22  ;;  %4045 = vmatprep.subr.mxu1 %v4201_v0  ;;  %v3078_v22 = vand.u32 4294901760, %v4711_v15  ;;  %v4725_v26 = vand.u32 4294901760, %v2950_v18 }
 0x434   :  { %4012 = vmatprep.subr.mxu0 %v4201_v0  ;;  %4046 = vmatpush3.msra.mxu1 %v4603_v25  ;;  %v4722_v25 = vsub.f32 %v2951_v42, %v4713_v17 }
 0x435   :  { %4013 = vmatpush3.msra.mxu0 %v4612_v32  ;;  %4047 = vmatprep.subr.mxu1 %v4201_v0  ;;  %v3079_v32 = vsub.f32 %v4711_v15, %v3078_v22  ;;  %v4736_v38 = vsub.f32 %v2950_v18, %v4725_v26 }
 0x436   :  { %4014 = vmatprep.subr.mxu0 %v4201_v0  ;;  %4016 = vmatprep.mubr.msk.f32.mxu0 %vm4202_vm0, %v4201_v0 }
 0x437   :  { %4015 = vmatpush3.msra.mxu0 %v4623_v43  ;;  %4048 = vmatpush3.msra.mxu1 %v4614_v33  ;;  %v3085_v33 = vand.u32 4294901760, %v4722_v25  ;;  %v3080_v43 = vand.u32 4294901760, %v3079_v32  ;;  %v3092_v49 = vand.u32 4294901760, %v4736_v38 }
 0x438   :  { %4049 = vmatprep.mubr.msk.f32.mxu1 %vm4202_vm0, %v4201_v0  ;;  %4017 = vmatmul.mubr.f32.vlgmr.msra.gmra.mxu0 %v2531_v16 }
 0x439   :  { %4030 = vmatprep.subr.mxu0 %v4201_v0  ;;  %4050 = vmatmul.mubr.f32.vlgmr.msra.gmra.mxu1 %v2530_v14  ;;  %v3086_v44 = vsub.f32 %v4722_v25, %v3085_v33  ;;  %v3093_v55 = vsub.f32 %v4736_v38, %v3092_v49 }
 0x43a   :  { %4031 = vmatpush3.msra.mxu0 %v2567_v21  ;;  %4038 = vmatprep.mubr.msk.f32.mxu0 %vm4202_vm0, %v4201_v0  ;;  %v3072_v21 = vsub.f32 %v4700_v40, %v3071_v47 }
 0x43b   :  { %4032 = vmatprep.subr.mxu0 %v4201_v0  ;;  %4071 = vmatprep.subr.mxu1 %v4201_v0  ;;  %v3087_v51 = vand.u32 4294901760, %v3086_v44  ;;  %v3094_v59 = vand.u32 4294901760, %v3093_v55 }
 0x43c   :  { %4033 = vmatpush3.msra.mxu0 %v2574_v31  ;;  %4087 = vmatprep.mubr.msk.f32.mxu1 %vm4202_vm0, %v4201_v0  ;;  %v3073_v31 = vand.u32 4294901760, %v3072_v21 }
 0x43d   :  { %4034 = vmatprep.subr.mxu0 %v4201_v0  ;;  %4072 = vmatpush3.msra.mxu1 %v3066_v20 }
 0x43e   :  { %4035 = vmatpush3.msra.mxu0 %v2581_v39  ;;  %4073 = vmatprep.subr.mxu1 %v4201_v0  ;;  %v2948_v39 = vld [vmem:[#allocation2 + $0xa0] sm:$0xff] }
 0x43f   :  { %4036 = vmatprep.subr.mxu0 %v4201_v0  ;;  %4074 = vmatpush3.msra.mxu1 %v3073_v31 }
 0x440   :  { %4037 = vmatpush3.msra.mxu0 %v2588_v48  ;;  %v4745_v48 = vand.u32 4294901760, %v2948_v39  ;;  %4075 = vmatprep.subr.mxu1 %v4201_v0 }
 0x441   :  { %4039 = vmatmul.mubr.f32.vlgmr.msra.gmra.mxu0 %v2530_v14  ;;  %4052 = vmatprep.subr.mxu0 %v4201_v0 }
 0x442   :  { %4068 = vmatprep.mubr.msk.f32.mxu0 %vm4202_vm0, %v4201_v0  ;;  %4053 = vmatpush3.msra.mxu0 %v4689_v28  ;;  %v4753_v53 = vsub.f32 %v2948_v39, %v4745_v48 }
 0x443   :  { %4054 = vmatprep.subr.mxu0 %v4201_v0  ;;  %4076 = vmatpush3.msra.mxu1 %v3080_v43 }
 0x444   :  { %4055 = vmatpush3.msra.mxu0 %v4694_v34  ;;  %4077 = vmatprep.subr.mxu1 %v4201_v0  ;;  %v3106_v57 = vand.u32 4294901760, %v4753_v53 }
 0x445   :  { %4056 = vmatprep.subr.mxu0 %v4201_v0  ;;  %4078 = vmatpush3.msra.mxu1 %v3087_v51  ;;  %v3501_v51 = vpop.permute.xlu1 %3500 }
 0x446   :  { %4057 = vmatpush3.msra.mxu0 %v4702_v41  ;;  %4079 = vmatprep.subr.mxu1 %v4201_v0  ;;  %v3107_v61 = vsub.f32 %v4753_v53, %v3106_v57 }
 0x447   :  { %4058 = vmatprep.subr.mxu0 %v4201_v0  ;;  %4080 = vmatpush3.msra.mxu1 %v3094_v59 }
 0x448   :  { %4059 = vmatpush3.msra.mxu0 %v4713_v17  ;;  %4081 = vmatprep.subr.mxu1 %v4201_v0  ;;  %v3108_v1 = vand.u32 4294901760, %v3107_v61 }
 0x449   :  { %4060 = vmatprep.subr.mxu0 %v4201_v0  ;;  %4082 = vmatpush3.msra.mxu1 %v3101_v60 }
 0x44a   :  { %4061 = vmatpush3.msra.mxu0 %v4725_v26  ;;  %4083 = vmatprep.subr.mxu1 %v4201_v0 }
 0x44b   :  { %4062 = vmatprep.subr.mxu0 %v4201_v0  ;;  %4084 = vmatpush3.msra.mxu1 %v3108_v1 }
 0x44c   :  { %4063 = vmatpush3.msra.mxu0 %v4732_v37  ;;  %4085 = vmatprep.subr.mxu1 %v4201_v0 }
 0x44d   :  { %4064 = vmatprep.subr.mxu0 %v4201_v0  ;;  %4086 = vmatpush3.msra.mxu1 %v3115_v5 }
 0x44e   :  { %4065 = vmatpush3.msra.mxu0 %v4745_v48  ;;  %4109 = vmatprep.subr.mxu1 %v4201_v0 }
 0x44f   :  { %4066 = vmatprep.subr.mxu0 %v4201_v0 }
 0x450   :  { %4067 = vmatpush3.msra.mxu0 %v4755_v54 }
 0x451   :  { %4090 = vmatprep.subr.mxu0 %v4201_v0 }
 0x4e7   :  { %v2627_v6 = vpop.f32.mrf.mxu1 }
 0x4e9   :  { %v4007_v7 = vpop.f32.mrf.mxu1 }
 0x4ef   :  { %v2784_v9 = vpop.f32.mrf.mxu1 }
 0x4f0   :  { %v2536_v10 = vpop.f32.mrf.mxu0 }
 0x4f1   :  { %v4029_v2 = vpop.f32.mrf.mxu1  ;;  %v2537_v14 = vadd.f32 %v2536_v10, %v2457_v12 }
 0x4f2   :  { %v3996_v13 = vpop.f32.mrf.mxu0 }
 0x4f3   :  { %v2628_v3 = vadd.f32 %v2627_v6, %v2537_v14 }
 0x4f8   :  { %v2707_v16 = vpop.f32.mrf.mxu0 }
 0x4f9   :  { %v2942_v19 = vpop.f32.mrf.mxu1  ;;  %v2708_v29 = vadd.f32 %v2707_v16, %v2628_v3 }
 0x4fa   :  { %v4018_v23 = vpop.f32.mrf.mxu0 }
 0x4fb   :  { %v4051_v24 = vpop.f32.mrf.mxu1  ;;  %v2785_v35 = vadd.f32 %v2784_v9, %v2708_v29 }
 0x501   :  { %v2867_v42 = vpop.f32.mrf.mxu0 }
 0x502   :  { %v2868_v46 = vadd.f32 %v2867_v42, %v2785_v35 }
 0x503   :  { %v4040_v18 = vpop.f32.mrf.mxu0 }
 0x504   :  { %v2943_v20 = vadd.f32 %v2942_v19, %v2868_v46 }
 0x506   :  { %v2946_v21 = vmax.f32 %v2943_v20, 0.0 }
 0x508   :  { %v2960_v27 = vsel %vm495_vm2, %v2946_v21, 0 }
 0x509   :  { %v4790_v31 = vand.u32 4294901760, %v2960_v27 }
 0x50b   :  { %v3036_v32 = vsub.f32 %v2960_v27, %v4790_v31  ;;  %4088 = vmatmul.mubr.f32.vlgmr.msra.gmra.mxu1 %v4790_v31 }
 0x50c   :  { %4110 = vmatpush3.msra.mxu1 %v4689_v28  ;;  %4125 = vmatprep.mubr.msk.f32.mxu1 %vm4202_vm0, %v4201_v0 }
 0x50d   :  { %4111 = vmatprep.subr.mxu1 %v4201_v0  ;;  %v3037_v39 = vand.u32 4294901760, %v3036_v32 }
 0x50e   :  { %4112 = vmatpush3.msra.mxu1 %v4694_v34 }
 0x50f   :  { %4113 = vmatprep.subr.mxu1 %v4201_v0  ;;  %v3038_v43 = vsub.f32 %v3036_v32, %v3037_v39 }
 0x510   :  { %4114 = vmatpush3.msra.mxu1 %v4702_v41 }
 0x511   :  { %4115 = vmatprep.subr.mxu1 %v4201_v0  ;;  %v3039_v44 = vand.u32 4294901760, %v3038_v43 }
 0x512   :  { %4116 = vmatpush3.msra.mxu1 %v4713_v17 }
 0x513   :  { %4117 = vmatprep.subr.mxu1 %v4201_v0  ;;  %4069 = vmatmul.mubr.f32.vlgmr.msra.gmra.mxu0 %v3039_v44 }
 0x514   :  { %4091 = vmatpush3.msra.mxu0 %v4692_v30  ;;  %4118 = vmatpush3.msra.mxu1 %v4725_v26 }
 0x515   :  { %4092 = vmatprep.subr.mxu0 %v4201_v0  ;;  %4119 = vmatprep.subr.mxu1 %v4201_v0 }
 0x516   :  { %4093 = vmatpush3.msra.mxu0 %v4700_v40  ;;  %4120 = vmatpush3.msra.mxu1 %v4732_v37 }
 0x517   :  { %4094 = vmatprep.subr.mxu0 %v4201_v0  ;;  %4121 = vmatprep.subr.mxu1 %v4201_v0 }
 0x518   :  { %4095 = vmatpush3.msra.mxu0 %v4711_v15  ;;  %4122 = vmatpush3.msra.mxu1 %v4745_v48 }
 0x519   :  { %4096 = vmatprep.subr.mxu0 %v4201_v0  ;;  %4123 = vmatprep.subr.mxu1 %v4201_v0 }
 0x51a   :  { %4097 = vmatpush3.msra.mxu0 %v4722_v25  ;;  %4124 = vmatpush3.msra.mxu1 %v4755_v54 }
 0x51b   :  { %4098 = vmatprep.subr.mxu0 %v4201_v0  ;;  %4126 = vmatmul.mubr.f32.vlgmr.msra.gmra.mxu1 %v3037_v39 }
 0x51c   :  { %4147 = vmatprep.subr.mxu1 %v4201_v0  ;;  %4099 = vmatpush3.msra.mxu0 %v4736_v38 }
 0x51d   :  { %4148 = vmatpush3.msra.mxu1 %v4689_v28  ;;  %4100 = vmatprep.subr.mxu0 %v4201_v0 }
 0x51e   :  { %4149 = vmatprep.subr.mxu1 %v4201_v0  ;;  %4101 = vmatpush3.msra.mxu0 %v4743_v45 }
 0x51f   :  { %4150 = vmatpush3.msra.mxu1 %v4694_v34  ;;  %4102 = vmatprep.subr.mxu0 %v4201_v0 }
 0x520   :  { %4151 = vmatprep.subr.mxu1 %v4201_v0  ;;  %4103 = vmatpush3.msra.mxu0 %v4753_v53 }
 0x521   :  { %4152 = vmatpush3.msra.mxu1 %v4702_v41  ;;  %4104 = vmatprep.subr.mxu0 %v4201_v0 }
 0x522   :  { %4153 = vmatprep.subr.mxu1 %v4201_v0  ;;  %4105 = vmatpush3.msra.mxu0 %v4768_v58 }
 0x523   :  { %4106 = vmatprep.mubr.msk.f32.mxu0 %vm4202_vm0, %v4201_v0  ;;  %4154 = vmatpush3.msra.mxu1 %v4713_v17 }
 0x524   :  { %4107 = vmatmul.mubr.f32.vlgmr.msra.gmra.mxu0 %v3036_v32  ;;  %4128 = vmatprep.subr.mxu0 %v4201_v0 }
 0x525   :  { %4155 = vmatprep.subr.mxu1 %v4201_v0  ;;  %4129 = vmatpush3.msra.mxu0 %v3064_v36 }
 0x526   :  { %4156 = vmatpush3.msra.mxu1 %v4725_v26  ;;  %4130 = vmatprep.subr.mxu0 %v4201_v0 }
 0x527   :  { %4157 = vmatprep.subr.mxu1 %v4201_v0  ;;  %4131 = vmatpush3.msra.mxu0 %v3071_v47  ;;  %v2957_v47 = vsub.s32 5, %v4351_v63 }
 0x528   :  { %4158 = vmatpush3.msra.mxu1 %v4732_v37  ;;  %4132 = vmatprep.subr.mxu0 %v4201_v0 }
 0x529   :  { %4159 = vmatprep.subr.mxu1 %v4201_v0  ;;  %4133 = vmatpush3.msra.mxu0 %v3078_v22  ;;  %v2958_v17 = vrot.slane %v4786_v11, %v2957_v47 }
 0x52a   :  { %4160 = vmatpush3.msra.mxu1 %v4745_v48  ;;  %4134 = vmatprep.subr.mxu0 %v4201_v0 }
 0x52b   :  { %4161 = vmatprep.subr.mxu1 %v4201_v0  ;;  %4135 = vmatpush3.msra.mxu0 %v3085_v33 }
 0x52c   :  { %4162 = vmatpush3.msra.mxu1 %v4755_v54  ;;  %4163 = vmatprep.mubr.msk.f32.mxu1 %vm4202_vm0, %v4201_v0 }
 0x52d   :  { %4136 = vmatprep.subr.mxu0 %v4201_v0  ;;  %4164 = vmatmul.mubr.f32.vlgmr.msra.gmra.mxu1 %v4790_v31 }
 0x52e   :  { %4137 = vmatpush3.msra.mxu0 %v3092_v49  ;;  %4144 = vmatprep.mubr.msk.f32.mxu0 %vm4202_vm0, %v4201_v0 }
 0x52f   :  { %4138 = vmatprep.subr.mxu0 %v4201_v0 }
 0x530   :  { %4139 = vmatpush3.msra.mxu0 %v3099_v52 }
 0x531   :  { %4140 = vmatprep.subr.mxu0 %v4201_v0 }
 0x532   :  { %4141 = vmatpush3.msra.mxu0 %v3106_v57 }
 0x533   :  { %4142 = vmatprep.subr.mxu0 %v4201_v0 }
 0x534   :  { %4143 = vmatpush3.msra.mxu0 %v3113_v62 }
 0x535   :  { %4145 = vmatmul.mubr.f32.vlgmr.msra.gmra.mxu0 %v4790_v31 }
 0x5cb   :  { %v3152_v28 = vpop.f32.mrf.mxu1 }
 0x5cd   :  { %v4089_v30 = vpop.f32.mrf.mxu1 }
 0x5d3   :  { %v3041_v34 = vpop.f32.mrf.mxu0 }
 0x5d4   :  { %v3042_v25 = vadd.f32 %v3041_v34, %v2958_v17 }
 0x5d5   :  { %v4070_v36 = vpop.f32.mrf.mxu0 }
 0x5d6   :  { %v3153_v0 = vadd.f32 %v3152_v28, %v3042_v25 }
 0x5db   :  { %v3321_v40 = vpop.f32.mrf.mxu1 }
 0x5dd   :  { %v4127_v41 = vpop.f32.mrf.mxu1 }
 0x5e4   :  { %v3240_v15 = vpop.f32.mrf.mxu0 }
 0x5e5   :  { %v3241_v37 = vadd.f32 %v3240_v15, %v3153_v0 }
 0x5e6   :  { %v4108_v22 = vpop.f32.mrf.mxu0 }
 0x5e7   :  { %v3322_v38 = vadd.f32 %v3321_v40, %v3241_v37 }
 0x5ed   :  { %v3495_v26 = vpop.f32.mrf.mxu1 }
 0x5ef   :  { %v4165_v33 = vpop.f32.mrf.mxu1 }
 0x5f5   :  { %v3416_v45 = vpop.f32.mrf.mxu0 }
 0x5f6   :  { %v3417_v48 = vadd.f32 %v3416_v45, %v3322_v38 }
 0x5f7   :  { %v4146_v49 = vpop.f32.mrf.mxu0 }
 0x5f8   :  { %v3496_v50 = vadd.f32 %v3495_v26, %v3417_v48 }
 0x5fa   :  { %v3503_v52 = vsel %vm32_vm1, %v3496_v50, %v3501_v51 }
 0x5fb   :  { %v3505_v53 = vsel %vm3504_vm4, %v3503_v52, 0.0 }
 0x5fc   :  { %3506 = vst.msk [vmem:[%s4883_s2] sm:$0xff] %vm1045_vm3, %v3505_v53 }
 0x5fd   :  { %3511 = vsyncpa [#allocation3], 1 }

</bundles_post_ra>
